<compile_context>
chip_gen: v6e
topology: v6e:2x2x1
jax: 0.10.0
libtpu: 0.0.40
codegen_flags: <defaults>
</compile_context>

<pallas_src>
import math

import jax
import jax.numpy as jnp
from jax.experimental import pallas as pl
from jax.experimental.pallas import tpu as pltpu


_LANE = 128


def _round_up(a, m):
    return (a + m - 1) // m * m


def _cdiv(a, b):
    return (a + b - 1) // b


def _make_kernel(C, D2, chunk, n_chunks, use_mxu):
    E = 2 * D2
    halves_aligned = (D2 % 8 == 0)   # f32 sublane alignment for the two half-writes

    def kernel(x_ref, w_ref, b_ref, o_ref):
        # x_ref: (1, C, ts) f32    w_ref: (D2, C) = (2*pi*W)^T f32
        # b_ref: (D2, 1) f32       o_ref: (1, E, ts) out dtype
        w2 = w_ref[...]
        b = b_ref[...]

        def do_chunk(off):
            x_c = x_ref[0, :, pl.ds(off, chunk)]            # (C, chunk) f32
            if use_mxu:
                # MXU projection.  HIGHEST precision is required: default TPU
                # matmul precision truncates to bf16 and the Fourier phases
                # (O(1e3) at scale=30) would be off by radians.
                xc = jax.lax.dot_general(
                    w2, x_c,
                    dimension_numbers=(((1,), (0,)), ((), ())),
                    precision=jax.lax.Precision.HIGHEST,
                    preferred_element_type=jnp.float32)
            else:
                # Exact-f32 per-channel broadcast-FMA on the VPU (C tiny, static).
                xc = w2[:, 0:1] * x_c[0:1, :]
                for c in range(1, C):
                    xc = xc + w2[:, c:c + 1] * x_c[c:c + 1, :]
            xc = xc + b
            s = jnp.sin(xc).astype(o_ref.dtype)
            co = jnp.cos(xc).astype(o_ref.dtype)
            if halves_aligned:
                o_ref[0, 0:D2, pl.ds(off, chunk)] = s
                o_ref[0, D2:E, pl.ds(off, chunk)] = co
            else:
                # Unaligned D2: one full-block store instead of masked partials.
                o_ref[0, :, pl.ds(off, chunk)] = jnp.concatenate([s, co], axis=0)

        if n_chunks <= 8:
            # Few chunks: static offsets / static slices (fully unrolled).
            for j in range(n_chunks):
                do_chunk(j * chunk)
        else:
            # Many chunks: real loop bounds the vreg working set (no spills).
            def body(j, carry):
                do_chunk(pl.multiple_of(j * chunk, chunk))
                return carry
            jax.lax.fori_loop(0, n_chunks, body, 0)

    return kernel


def conv_fourier_projection(x, W, bias=None, *, tile_s=8192, out_dtype=None,
                            use_mxu=True, vmem_budget_bytes=24 * 1024 * 1024):
    """x: [B, C, *spatial] (NCHW-style). W: [C, embed_dim//2]. bias: [embed_dim//2] or None.
    Returns [B, embed_dim, *spatial] in out_dtype (default: x.dtype)."""
    B, C = x.shape[0], x.shape[1]
    spatial = tuple(x.shape[2:])
    D2 = W.shape[1]
    E = 2 * D2
    out_dtype = jnp.dtype(x.dtype) if out_dtype is None else jnp.dtype(out_dtype)
    out_isz = out_dtype.itemsize

    S = math.prod(spatial) if spatial else 1

    # Channels-first, flatten spatial only (free reshape, no transpose).
    # Keep the projection in f32: the Fourier phases need full precision.
    x3 = x.reshape(B, C, S).astype(jnp.float32)
    W2 = ((2.0 * math.pi) * W).T.astype(jnp.float32)        # (D2, C), scaled once
    if bias is None:
        b2 = jnp.zeros((D2, 1), jnp.float32)
    else:
        b2 = bias.reshape(D2, 1).astype(jnp.float32)         # (D2, 1)

    # ---- spatial tile selection -------------------------------------------
    bytes_per_col = C * 4 + E * out_isz                       # per spatial column
    # Clamp so 2x-buffered in+out blocks stay under the budget (v7x-safe 24 MiB).
    ts = min(int(tile_s), max(_LANE, vmem_budget_bytes // (2 * bytes_per_col)))
    ts = max(_LANE, (ts // _LANE) * _LANE)                    # lane-dense tile
    ts = min(ts, _round_up(S, _LANE))                         # don't exceed problem
    # Keep >= 4 grid steps when possible so both v7x TensorCores get work.
    while B * _cdiv(S, ts) < 4 and ts >= 2 * _LANE:
        ts = max(_LANE, (ts // 2 // _LANE) * _LANE)

    # In-kernel lane strip-mine width (largest 128-multiple <= 512 dividing ts).
    chunk = next(c for c in (512, 384, 256, _LANE) if ts % c == 0)
    n_chunks = ts // chunk

    # Pad S to a multiple of ts (no full-S block fallback -> bounded VMEM).
    S_pad = _cdiv(S, ts) * ts
    if S_pad != S:
        x3 = jnp.pad(x3, ((0, 0), (0, 0), (0, S_pad - S)))

    grid = (B, S_pad // ts)

    block_bytes = ts * bytes_per_col
    vmem_limit = int(max(16 * 1024 * 1024,
                         2 * block_bytes + D2 * (C + 1) * 4 + (8 << 20)))

    kernel = _make_kernel(C, D2, chunk, n_chunks, use_mxu)

    out3 = pl.pallas_call(
        kernel,
        out_shape=jax.ShapeDtypeStruct((B, E, S_pad), out_dtype),
        grid_spec=pltpu.PrefetchScalarGridSpec(
            num_scalar_prefetch=0,
            grid=grid,
            in_specs=[
                pl.BlockSpec((1, C, ts), lambda b, s: (b, 0, s)),   # x tile
                pl.BlockSpec((D2, C), lambda b, s: (0, 0)),         # W2, resident
                pl.BlockSpec((D2, 1), lambda b, s: (0, 0)),         # bias, resident
            ],
            out_specs=pl.BlockSpec((1, E, ts), lambda b, s: (b, 0, s)),
        ),
        compiler_params=pltpu.CompilerParams(
            dimension_semantics=("parallel", "parallel"),
            vmem_limit_bytes=vmem_limit,
        ),
        cost_estimate=pl.CostEstimate(
            flops=2 * B * S_pad * D2 * C,
            transcendentals=B * S_pad * E,
            bytes_accessed=B * S_pad * (C * 4 + E * out_isz) + D2 * (C + 1) * 4,
        ),
    )(x3, W2, b2)

    if S_pad != S:
        out3 = out3[:, :, :S]
    return out3.reshape((B, E) + spatial)


if __name__ == "__main__":
    key = jax.random.PRNGKey(0)
    k_x, k_w, k_b = jax.random.split(key, 3)

    # Small shapes consistent with the module's forward (NCHW input).
    B, C, H, Wd = 2, 4, 16, 16
    input_dim, embed_dim, scale = C, 32, 30.0
    D2 = embed_dim // 2

    x = jax.random.normal(k_x, (B, C, H, Wd), dtype=jnp.float32)
    # Deterministic synthetic "buffers" (module __init__: randn * scale).
    W_buf = jax.random.normal(k_w, (input_dim, D2), dtype=jnp.float32) * scale
    bias_buf = jax.random.normal(k_b, (D2,), dtype=jnp.float32) * scale

    out = jax.block_until_ready(conv_fourier_projection(x, W_buf, bias_buf))

    # Pure-JAX reference (intended PyTorch semantics), high-precision matmul.
    xc_ref = jnp.einsum("bchw,cd->bdhw", x, 2.0 * math.pi * W_buf,
                        precision=jax.lax.Precision.HIGHEST)
    xc_ref = xc_ref + bias_buf[None, :, None, None]
    ref = jnp.concatenate([jnp.sin(xc_ref), jnp.cos(xc_ref)], axis=1)

    assert out.shape == (B, embed_dim, H, Wd), out.shape
    err = float(jnp.max(jnp.abs(out - ref)))
    # With scale=30 the sin/cos arguments are O(1e3); f32 rounding /
    # summation-order / range-reduction differences give ~1e-4-class output
    # noise, so compare with a tolerance that still catches any real (O(1))
    # layout / bias / precision bug.
    assert err < 5e-3, err
    print("KERNEL_OK")
</pallas_src>

<mosaic_0001>
module attributes {stable_mosaic.version = 11 : i64} {
  func.func @kernel(%arg0: i32, %arg1: i32, %arg2: memref<1x4x128xf32, #tpu.memory_space<vmem>>, %arg3: memref<16x4xf32, #tpu.memory_space<vmem>>, %arg4: memref<16x1xf32, #tpu.memory_space<vmem>>, %arg5: memref<1x32x128xf32, #tpu.memory_space<vmem>>) attributes {dimension_semantics = [#tpu.dimension_semantics<parallel>, #tpu.dimension_semantics<parallel>], iteration_bounds = array<i64: 2, 2>, scalar_prefetch = 0 : i64, scratch_operands = 0 : i64, tpu.core_type = #tpu.core_type<tc>, window_params = [{transform_indices = @transform_0, window_bounds = array<i64: 1, 4, 128>}, {pipeline_mode = #tpu.pipeline_mode<synchronous>, transform_indices = @transform_1, window_bounds = array<i64: 16, 4>}, {pipeline_mode = #tpu.pipeline_mode<synchronous>, transform_indices = @transform_2, window_bounds = array<i64: 16, 1>}, {transform_indices = @transform_3, window_bounds = array<i64: 1, 32, 128>}]} {
    %c0 = arith.constant 0 : index
    %c0_0 = arith.constant 0 : index
    %0 = vector.load %arg3[%c0, %c0_0] : memref<16x4xf32, #tpu.memory_space<vmem>>, vector<16x4xf32>
    %c0_1 = arith.constant 0 : index
    %c0_2 = arith.constant 0 : index
    %1 = vector.load %arg4[%c0_1, %c0_2] : memref<16x1xf32, #tpu.memory_space<vmem>>, vector<16x1xf32>
    %c0_3 = arith.constant 0 : index
    %c0_4 = arith.constant 0 : index
    %c0_5 = arith.constant 0 : index
    %2 = vector.load %arg2[%c0_3, %c0_4, %c0_5] : memref<1x4x128xf32, #tpu.memory_space<vmem>>, vector<1x4x128xf32>
    %3 = vector.shape_cast %2 : vector<1x4x128xf32> to vector<4x128xf32>
    %cst = arith.constant dense<0.000000e+00> : vector<16x128xf32>
    %4 = tpu.matmul %0, %3, %cst {dimension_numbers = #tpu.dot_dimension_numbers<[1], [0], [0], [1], [0, 0, 1, 1], [], []>, precision = #tpu.contract_precision<fp32>} : vector<16x4xf32>, vector<4x128xf32>, vector<16x128xf32> -> vector<16x128xf32>
    %5 = vector.broadcast %1 : vector<16x1xf32> to vector<16x128xf32>
    %6 = arith.addf %4, %5 : vector<16x128xf32>
    %7 = math.sin %6 : vector<16x128xf32>
    %8 = math.cos %6 : vector<16x128xf32>
    %c0_6 = arith.constant 0 : index
    %c0_7 = arith.constant 0 : index
    %c0_8 = arith.constant 0 : index
    %9 = vector.load %arg5[%c0_6, %c0_7, %c0_8] : memref<1x32x128xf32, #tpu.memory_space<vmem>>, vector<1x16x128xf32>
    %10 = vector.shape_cast %9 : vector<1x16x128xf32> to vector<16x128xf32>
    %11 = vector.shape_cast %7 : vector<16x128xf32> to vector<1x16x128xf32>
    tpu.vector_store %arg5[%c0_6, %c0_7, %c0_8], %11 {strides = array<i32>} : memref<1x32x128xf32, #tpu.memory_space<vmem>>, vector<1x16x128xf32>,
    %c0_9 = arith.constant 0 : index
    %c16 = arith.constant 16 : index
    %c0_10 = arith.constant 0 : index
    %12 = vector.load %arg5[%c0_9, %c16, %c0_10] : memref<1x32x128xf32, #tpu.memory_space<vmem>>, vector<1x16x128xf32>
    %13 = vector.shape_cast %12 : vector<1x16x128xf32> to vector<16x128xf32>
    %14 = vector.shape_cast %8 : vector<16x128xf32> to vector<1x16x128xf32>
    tpu.vector_store %arg5[%c0_9, %c16, %c0_10], %14 {strides = array<i32>} : memref<1x32x128xf32, #tpu.memory_space<vmem>>, vector<1x16x128xf32>,
    return
  }
  func.func @transform_0(%arg0: i32, %arg1: i32) -> (i32, i32, i32) {
    %c0_i32 = arith.constant 0 : i32
    %c0_i32_0 = arith.constant 0 : i32
    return %arg0, %c0_i32, %arg1 : i32, i32, i32
  }
  func.func @transform_1(%arg0: i32, %arg1: i32) -> (i32, i32) {
    %c0_i32 = arith.constant 0 : i32
    %c0_i32_0 = arith.constant 0 : i32
    %c0_i32_1 = arith.constant 0 : i32
    return %c0_i32, %c0_i32_0 : i32, i32
  }
  func.func @transform_2(%arg0: i32, %arg1: i32) -> (i32, i32) {
    %c0_i32 = arith.constant 0 : i32
    %c0_i32_0 = arith.constant 0 : i32
    %c0_i32_1 = arith.constant 0 : i32
    return %c0_i32, %c0_i32_0 : i32, i32
  }
  func.func @transform_3(%arg0: i32, %arg1: i32) -> (i32, i32, i32) {
    %c0_i32 = arith.constant 0 : i32
    %c0_i32_0 = arith.constant 0 : i32
    return %arg0, %c0_i32, %arg1 : i32, i32, i32
  }
}

</mosaic_0001>

<bundles_post_ra>
// kernel: tpu_custom_call.1
= control target key start
LH: loop header
LB: loop body
LE: loop exit
PB: predicated region body
PF: predicated region fallthrough
CT: control target
= control target key end

     0   :  { %8 = vsyncpa [#allocation3], 0  ;;  %s1747_s0 = inlined_call_operand.vmem [shape: f32[2,4,256], index: 0, kind: input, shape index: {}]   ;;  %s1748_s1 = inlined_call_operand.vmem [shape: f32[16,4], index: 1, kind: input, shape index: {}]   ;;  %s1749_s2 = inlined_call_operand.vmem [shape: f32[16,1], index: 2, kind: input, shape index: {}]   ;;  %s1750_s3 = inlined_call_operand.hbm [shape: f32[2,32,256], index: 3, kind: output, shape index: {}]  }
   0x1   :  { %10 = vsyncpa [#allocation3 + $0x1], 0  ;;  %s1523_s12 = smov 0   ;;  %s1525_s13 = smov 0  }
   0x2   :  { %s1527_s14 = smov 0   ;;  %s1529_s15 = smov 0  }
   0x3   :  { %s1531_s16 = smov 0   ;;  %s1533_s17 = smov 0  }
   0x4   :  { %s1535_s18 = smov 0   ;;  %s1537_s19 = smov 0  }
   0x5 LB: > { %s1223_s20 = sadd.s32 4294967295, %s1490_s19   ;;  %s1224_s21 = sadd.s32 4294967294, %s1490_s19   ;;  %s1490_s19 = sphi %s1537_s19, %s16_s19   ;;  %s1486_s18 = sphi %s1535_s18, %s1761_s18   ;;  %s1482_s17 = sphi %s1533_s17, %s1760_s17   ;;  %s1478_s16 = sphi %s1531_s16, %s1759_s16   ;;  %s1474_s15 = sphi %s1529_s15, %s1758_s15   ;;  %s1470_s14 = sphi %s1527_s14, %s1757_s14   ;;  %s1466_s13 = sphi %s1525_s13, %s1756_s13   ;;  %s1462_s12 = sphi %s1523_s12, %s1755_s12  }
   0x6   : > { %s25_s22 = sadd.s32 1, %s1482_s17  ;;  %s28_s23 = sadd.s32 1, %s1486_s18 }
   0x7   : > { %p26_p0 = scmp.ge.s32.totalorder %s25_s22, 2  ;;  %p117_p1 = scmp.ne.s32.totalorder %s1470_s14, %s1466_s13 }
   0x8   : > { %p118_p2 = scmp.eq.s32.totalorder %s1223_s20, 3  ;;  %p123_p5 = scmp.ne.s32.totalorder %s1466_s13, %s1462_s12 }
   0x9   : > { %s1763_s22 = smov (%p26_p0, %s25_s22), 0  ;;  %s1765_s23 = smov (!%p26_p0, %s28_s23), %s1486_s18 }
   0xa   : > { %s103_s24 = ssub.s32 %s1482_s17, %s1763_s22  ;;  %p1574_p3 = por %p118_p2, %p117_p1 }
   0xb   : > { %p30_p4 = scmp.ge.s32.totalorder %s1765_s23, 2  ;;  %p124_p6 = scmp.eq.s32.totalorder %s1224_s21, 3 }
   0xc   : > { %p1227_p7 = scmp.ge.s32.totalorder %s1490_s19, 1  ;;  %p159_p9 = scmp.lt.s32.totalorder %s1490_s19, 5 }
   0xd   : > { %s1767_s23 = smov (%p30_p4, %s1765_s23), 0  ;;  %p1583_p8 = por %p124_p6, %p123_p5 }
   0xe   : > { %s102_s27 = ssub.s32 %s1486_s18, %s1767_s23  ;;  %s107_s28 = sadd.s32 1, %s1470_s14 }
   0xf   : > { %s104_s29 = sor.u32 %s103_s24, %s102_s27  ;;  %p160_p10 = pnand %p1227_p7, %p159_p9 }
  0x10   : > { %p105_p11 = scmp.eq.s32.totalorder %s104_s29, 0  ;;  %p186_p12 = scmp.lt.s32.totalorder (!%p160_p10), %s1478_s16, 1 }
  0x11   : > { %163 = sbr.rel (%p160_p10) target bundleno = 353 (0x161), region = 32  ;;  %p188_p13 = scmp.lt.s32.totalorder (!%p160_p10), %s1474_s15, 1 }
  0x12   : > { %s1592_s30 = scalar_select %p105_p11, %s1470_s14, %s107_s28  }
  0x13   : > { %s183_s6 = sand.u32 (!%p160_p10), 1, %s1466_s13   ;;  %s1248_s8 = sshll.u32 (!%p160_p10), %s1478_s16, 3 }
  0x14   : > { %s1228_s7 = sshll.u32 (!%p160_p10), %s183_s6, 5  ;;  %s1696_s24 = scalar_lea.sflag (!%p160_p10), [#allocation3], %s183_s6 }
  0x15   : > { %s185_s9 = scalar_lea.vmem (!%p160_p10), [#allocation2], %s1228_s7 }
  0x16   : > { %v194_v0 = vld [vmem:[%s1748_s1] sm:$0xff]  ;;  %v195_v1 = vld [vmem:[%s1748_s1 + $0x8] sm:$0xff]  ;;  %vm209_vm0 = vcmask 31744   ;;  %s187_s10 = scalar_select %p186_p12, %s1478_s16, 1  ;;  %v1492_v7 = vmov 0   ;;  %vm216_vm1 = vcmask 1043456  }
  0x17   : > { %v211_v2 = vsel %vm209_vm0, %v194_v0, 0  ;;  %v214_v3 = vsel %vm209_vm0, %v195_v1, 0  ;;  %v196_v4 = vld [vmem:[%s1749_s2] sm:$0xff]  ;;  %1389 = vset.pattern.permute.xlu0 %v1492_v7  ;;  %s189_s11 = scalar_select %p188_p13, %s1474_s15, 1  ;;  %v197_v10 = vld [vmem:[%s1749_s2 + $0x8] sm:$0xff] }
  0x18   : > { %v286_v5 = vand.u32 4294901760, %v211_v2  ;;  %v296_v6 = vand.u32 4294901760, %v214_v3  ;;  %201 = vperm.xlu0 %1389, %v196_v4   ;;  %s1229_s20 = sshll.u32 %s187_s10, 1  ;;  %v1493_v4 = vmov 683565275   ;;  %s1139_s10 = sadd.s32 %s1474_s15, %s1248_s8 }
  0x19   : > { %s191_s27 = sadd.s32 %s1229_s20, %s189_s11  ;;  %v1494_v7 = vmov 2475754826   ;;  %s1142_s11 = sshll.u32 %s185_s9, 4  ;;  %s1686_s11 = int_to_ptr.vmem [resolvable:$true] %s1142_s11 }
  0x1a   : > { %v287_v8 = vsub.f32 %v211_v2, %v286_v5  ;;  %v297_v9 = vsub.f32 %v214_v3, %v296_v6  ;;  %1277 = vmatprep.mubr.f32.mxu1 %v286_v5  ;;  %s1230_s28 = sshll.u32 %s191_s27, 2  ;;  %s1249_s20 = sshll.u32 %s1139_s10, 7 }
  0x1b   : > { %s193_s5 = scalar_lea.vmem %s1747_s0, %s1230_s28  ;;  %s1691_s21 = scalar_lea.hbm %s1750_s3, %s1249_s20 }
  0x1c   : > { %v288_v11 = vand.u32 4294901760, %v287_v8  ;;  %v298_v12 = vand.u32 4294901760, %v297_v9  ;;  %206 = vperm.xlu0 %1389, %v197_v10   ;;  %v198_v13 = vld [vmem:[%s193_s5] sm:$0xf]  ;;  %s1398_s27 = scalar_lea.vmem %s1686_s11, 512  ;;  %s1499_s28 = smov [#allocation2]  }
  0x1d   : > { %v218_v16 = vsel %vm216_vm1, %v198_v13, 0  ;;  %v1497_v13 = vmov 920167782   ;;  %p1399_p0 = scmp.ne.s32.totalorder %s1686_s11, %s1398_s27  ;;  %s1402_s29 = sshll.u32 %s1499_s28, 4  ;;  %s1403_s29 = int_to_ptr.vmem [resolvable:$false] %s1402_s29 }
  0x1e   : > { %v289_v14 = vsub.f32 %v287_v8, %v288_v11  ;;  %v299_v15 = vsub.f32 %v297_v9, %v298_v12  ;;  %v251_v17 = vand.u32 4294901760, %v218_v16  ;;  %s1404_s4 = scalar_lea.vmem %s1403_s29, 1024  ;;  %p1405_p4 = scmp.lt.s32.totalorder %s1686_s11, %s1403_s29 }
  0x1f   : > { %p1400_p1 = pnand %p1399_p0, %p1574_p3  ;;  %p1406_p5 = scmp.lt.s32.totalorder %s1404_s4, %s1398_s27 }
  0x20   : > { %v290_v18 = vand.u32 4294901760, %v289_v14  ;;  %v300_v19 = vand.u32 4294901760, %v299_v15  ;;  %1270 = vmatprep.subr.mxu0 %v251_v17  ;;  %v338_v20 = vsub.f32 %v218_v16, %v251_v17 }
  0x21   : > { %1271 = vmatpush3.msra.mxu0 %v251_v17  ;;  %p1401_p2 = pneg %p1400_p1  ;;  %p1407_p6 = por %p1406_p5, %p1405_p4 }
  0x22   : > { %1272 = vmatprep.mubr.f32.mxu0 %v290_v18  ;;  %v339_v21 = vand.u32 4294901760, %v338_v20  ;;  %1280 = vmatprep.subr.mxu0 %v338_v20 }
  0x23   : > { %1273 = vmatmul.mubr.f32.vlgmr.msra.gmra.mxu0 %v300_v19  ;;  %p1408_p7 = pnand %p1407_p6, %p1401_p2 }
  0x24   : > { %1281 = vmatpush3.msra.mxu0 %v338_v20  ;;  %1282 = vmatprep.mubr.f32.mxu0 %v287_v8  ;;  %v340_v22 = vsub.f32 %v338_v20, %v339_v21  ;;  %v1498_v20 = vmov 1326507024  }
  0x25   : > { %1290 = vmatprep.subr.mxu0 %v339_v21 }
  0x26   : > { %v341_v23 = vand.u32 4294901760, %v340_v22 }
  0x27   : > { %1283 = vmatmul.mubr.f32.vlgmr.msra.gmra.mxu0 %v297_v9  ;;  %v1495_v9 = vmov 2131351028  }
  0x28   : > { %1291 = vmatpush3.msra.mxu0 %v339_v21  ;;  %1292 = vmatprep.mubr.f32.mxu0 %v286_v5 }
  0x29   : > { %1275 = vmatprep.subr.mxu1 %v341_v23 }
  0x2a   : > { %1276 = vmatpush3.msra.mxu1 %v341_v23 }
  0x2b   : > { %1278 = vmatmul.mubr.f32.vlgmr.msra.gmra.mxu1 %v296_v6  ;;  %1285 = vmatprep.subr.mxu1 %v251_v17 }
  0x2c   : > { %1286 = vmatpush3.msra.mxu1 %v251_v17  ;;  %1287 = vmatprep.mubr.f32.mxu1 %v288_v11  ;;  %v1496_v11 = vmov 2102212464  }
  0x2d   : > { %1295 = vmatprep.subr.mxu1 %v251_v17  ;;  %1293 = vmatmul.mubr.f32.vlgmr.msra.gmra.mxu0 %v296_v6 }
  0x2f   : > { %1288 = vmatmul.mubr.f32.vlgmr.msra.gmra.mxu1 %v298_v12 }
  0x30   : > { %1296 = vmatpush3.msra.mxu1 %v251_v17  ;;  %1297 = vmatprep.mubr.f32.mxu1 %v286_v5 }
  0x33   : > { %1298 = vmatmul.mubr.f32.vlgmr.msra.gmra.mxu1 %v296_v6 }
  0x93   : > { %v202_v24 = vpop.permute.xlu0 %201 }
  0x97   : > { %v207_v27 = vpop.permute.xlu0 %206 }
  0xe3   : > { %v1274_v25 = vpop.f32.mrf.mxu0 }
  0xe4   : > { %v303_v29 = vadd.f32 %v1274_v25, %v207_v27 }
  0xe5   : > { %v292_v26 = vpop.f32.mrf.mxu0 }
  0xe6   : > { %v293_v32 = vadd.f32 %v292_v26, %v202_v24 }
  0xe7   : > { %v1284_v28 = vpop.f32.mrf.mxu0 }
  0xe9   : > { %v458_v31 = vpop.f32.mrf.mxu0 }
  0xeb   : > { %v1279_v30 = vpop.f32.mrf.mxu1 }
  0xec   : > { %v385_v33 = vadd.f32 %v1279_v30, %v303_v29 }
  0xed   : > { %v378_v34 = vpop.f32.mrf.mxu1  ;;  %v1294_v38 = vpop.f32.mrf.mxu0 }
  0xee   : > { %v466_v35 = vadd.f32 %v1284_v28, %v385_v33  ;;  %v379_v36 = vadd.f32 %v378_v34, %v293_v32 }
  0xef   : > { %v1289_v37 = vpop.f32.mrf.mxu1  ;;  %v621_v44 = vpop.f32.mrf.mxu0 }
  0xf0   : > { %v459_v39 = vadd.f32 %v458_v31, %v379_v36  ;;  %v548_v40 = vadd.f32 %v1289_v37, %v466_v35 }
  0xf1   : > { %v539_v41 = vpop.f32.mrf.mxu1 }
  0xf2   : > { %v628_v42 = vadd.f32 %v1294_v38, %v548_v40  ;;  %v540_v43 = vadd.f32 %v539_v41, %v459_v39 }
  0xf3   : > { %v1299_v45 = vpop.f32.mrf.mxu1 }
  0xf4   : > { %v622_v46 = vadd.f32 %v621_v44, %v540_v43  ;;  %v1613_v47 = vadd.f32 %v1299_v45, %v628_v42 }
  0xf5   : > { %v699_v48 = vpop.f32.mrf.mxu1 }
  0xf6   : > { %v813_v49 = vand.u32 2147483647, %v1613_v47  ;;  %v816_v50 = vand.u32 2139095040, %v1613_v47  ;;  %v1617_v51 = vadd.f32 %v699_v48, %v622_v46  ;;  %vm815_vm0 = vcmp.lt.s32.totalorder %v1613_v47, 0 }
  0xf8   : > { %v817_v52 = vshrl.u32 %v816_v50, 23  ;;  %v820_v53 = vand.u32 8388607, %v813_v49  ;;  %v712_v54 = vand.u32 2139095040, %v1617_v51  ;;  %v709_v56 = vand.u32 2147483647, %v1617_v51 }
  0xf9   : > { %vm814_vm1 = vcmp.le.f32.partialorder %v813_v49, 0.7853982 }
  0xfa   : > { %v1235_v55 = vadd.s32 4294967169, %v817_v52  ;;  %v713_v57 = vshrl.u32 %v712_v54, 23  ;;  %v821_v59 = vor.u32 8388608, %v820_v53  ;;  %v716_v61 = vand.u32 8388607, %v709_v56 }
  0xfc   : > { %v823_v58 = vadd.s32 1, %v1235_v55  ;;  %v1231_v60 = vadd.s32 4294967169, %v713_v57  ;;  %v1625_v2 = vshll.u32 %v821_v59, 8  ;;  %v717_v6 = vor.u32 8388608, %v716_v61 }
  0xfe   : > { %vm824_vm2 = vcmp.gt.s32.totalorder %v823_v58, 0  ;;  %v719_v63 = vadd.s32 1, %v1231_v60  ;;  %v757_v39 = vshll.u32 %v717_v6, 8 }
  0xff   : > { %v825_v62 = vsel %vm824_vm2, %v823_v58, 0  ;;  %vm711_vm2 = vcmp.lt.s32.totalorder %v1617_v51, 0 }
 0x100   : > { %v826_v0 = vshrl.u32 %v825_v62, 5  ;;  %v827_v1 = vand.u32 31, %v825_v62  ;;  %vm720_vm3 = vcmp.gt.s32.totalorder %v719_v63, 0 }
 0x101   : > { %v721_v25 = vsel %vm720_vm3, %v719_v63, 0  ;;  %vm1671_vm3 = vcmp.le.f32.partialorder %v709_v56, 0.7853982 }
 0x102   : > { %v828_v3 = vsub.s32 32, %v827_v1  ;;  %v830_v5 = vshll.u32 %v1493_v4, %v827_v1  ;;  %v833_v8 = vshll.u32 %v1494_v7, %v827_v1  ;;  %v836_v10 = vshll.u32 %v1495_v9, %v827_v1 }
 0x103   : > { %v839_v12 = vshll.u32 %v1496_v11, %v827_v1  ;;  %v842_v14 = vshll.u32 %v1497_v13, %v827_v1  ;;  %vm845_vm4 = vcmp.lt.s32.totalorder %v826_v0, 1  ;;  %vm847_vm5 = vcmp.lt.s32.totalorder %v826_v0, 3 }
 0x104   : > { %v831_v15 = vshrl.u32 %v1494_v7, %v828_v3  ;;  %v834_v16 = vshrl.u32 %v1495_v9, %v828_v3  ;;  %v837_v17 = vshrl.u32 %v1496_v11, %v828_v3  ;;  %v829_v18 = vshrl.u32 %v1493_v4, %v828_v3 }
 0x105   : > { %v840_v19 = vshrl.u32 %v1497_v13, %v828_v3  ;;  %v843_v21 = vshrl.u32 %v1498_v20, %v828_v3  ;;  %vm848_vm6 = vcmp.lt.s32.totalorder %v826_v0, 4  ;;  %v723_v28 = vand.u32 31, %v721_v25 }
 0x106   : > { %v832_v22 = vor.u32 %v831_v15, %v830_v5  ;;  %v835_v23 = vor.u32 %v834_v16, %v833_v8  ;;  %v838_v24 = vor.u32 %v837_v17, %v836_v10  ;;  %vm846_vm7 = vcmp.lt.s32.totalorder %v826_v0, 2 }
 0x107   : > { %v841_v26 = vor.u32 %v840_v19, %v839_v12  ;;  %v844_v27 = vor.u32 %v843_v21, %v842_v14  ;;  %v724_v36 = vsub.s32 32, %v723_v28  ;;  %v722_v43 = vshrl.u32 %v721_v25, 5 }
 0x108   : > { %v849_v29 = vsel %vm845_vm4, %v829_v18, %v832_v22  ;;  %v850_v30 = vsel %vm848_vm6, %v838_v24, 2102212464  ;;  %v853_v31 = vsel %vm845_vm4, %v832_v22, %v835_v23  ;;  %v857_v32 = vsel %vm845_vm4, %v835_v23, %v838_v24 }
 0x109   : > { %v851_v33 = vsel %vm847_vm5, %v835_v23, %v850_v30  ;;  %v854_v34 = vsel %vm848_vm6, %v841_v26, 920167782  ;;  %v858_v35 = vsel %vm848_vm6, %v844_v27, 1326507024  ;;  %v726_v50 = vshll.u32 %v1493_v4, %v723_v28 }
 0x10a   : > { %v855_v37 = vsel %vm847_vm5, %v838_v24, %v854_v34  ;;  %v859_v38 = vsel %vm847_vm5, %v841_v26, %v858_v35  ;;  %v852_v40 = vsel %vm846_vm7, %v849_v29, %v851_v33  ;;  %v727_v52 = vshrl.u32 %v1494_v7, %v724_v36 }
 0x10b   : > { %v856_v41 = vsel %vm846_vm7, %v853_v31, %v855_v37  ;;  %v860_v42 = vsel %vm846_vm7, %v857_v32, %v859_v38  ;;  %v729_v53 = vshll.u32 %v1494_v7, %v723_v28  ;;  %v730_v54 = vshrl.u32 %v1495_v9, %v724_v36 }
 0x10c   : > { %v1637_v44 = vmul.u32.u64.low %v1625_v2, %v860_v42  ;;  %v1638_v45 = vmul.u32.u64.high %v1625_v2, %v860_v42, %v1637_v44  ;;  %v1641_v46 = vmul.u32.u64.low %v1625_v2, %v856_v41  ;;  %v1642_v48 = vmul.u32.u64.high %v1625_v2, %v856_v41, %v1641_v46 }
 0x10d   : > { %v732_v55 = vshll.u32 %v1495_v9, %v723_v28  ;;  %v733_v57 = vshrl.u32 %v1496_v11, %v724_v36  ;;  %v735_v58 = vshll.u32 %v1496_v11, %v723_v28  ;;  %v736_v59 = vshrl.u32 %v1497_v13, %v724_v36 }
 0x10e   : > { %v728_v60 = vor.u32 %v727_v52, %v726_v50  ;;  %v731_v61 = vor.u32 %v730_v54, %v729_v53  ;;  %v738_v62 = vshll.u32 %v1497_v13, %v723_v28  ;;  %v739_v63 = vshrl.u32 %v1498_v20, %v724_v36 }
 0x10f   : > { %v868_v0 = vmul.u32 %v1625_v2, %v852_v40  ;;  %vm870_vm8 = vc.u32 %v1638_v45, %v1641_v46  ;;  %v871_v1 = vadd.s32 1, %v1642_v48  ;;  %v734_v3 = vor.u32 %v733_v57, %v732_v55 }
 0x110   : > { %v725_v5 = vshrl.u32 %v1493_v4, %v724_v36  ;;  %v737_v6 = vor.u32 %v736_v59, %v735_v58  ;;  %v740_v7 = vor.u32 %v739_v63, %v738_v62  ;;  %vm741_vm9 = vcmp.lt.s32.totalorder %v722_v43, 1 }
 0x111   : > { %v872_v8 = vsel %vm870_vm8, %v871_v1, %v1642_v48  ;;  %vm743_vm10 = vcmp.lt.s32.totalorder %v722_v43, 3  ;;  %vm744_vm11 = vcmp.lt.s32.totalorder %v722_v43, 4  ;;  %v749_v9 = vsel %vm741_vm9, %v728_v60, %v731_v61 }
 0x112   : > { %v873_v10 = vadd.s32 %v872_v8, %v868_v0  ;;  %v746_v11 = vsel %vm744_vm11, %v734_v3, 2102212464  ;;  %v750_v12 = vsel %vm744_vm11, %v737_v6, 920167782  ;;  %v753_v2 = vsel %vm741_vm9, %v731_v61, %v734_v3 }
 0x113   : > { %vm742_vm12 = vcmp.lt.s32.totalorder %v722_v43, 2  ;;  %v745_v13 = vsel %vm741_vm9, %v725_v5, %v728_v60  ;;  %v751_v14 = vsel %vm743_vm10, %v734_v3, %v750_v12  ;;  %v754_v15 = vsel %vm744_vm11, %v740_v7, 1326507024 }
 0x114   : > { %v874_v16 = vadd.s32 536870912, %v873_v10  ;;  %v747_v17 = vsel %vm743_vm10, %v731_v61, %v746_v11  ;;  %v752_v18 = vsel %vm742_vm12, %v749_v9, %v751_v14  ;;  %v755_v4 = vsel %vm743_vm10, %v737_v6, %v754_v15 }
 0x115   : > { %v756_v19 = vsel %vm742_vm12, %v753_v2, %v755_v4  ;;  %v1652_v20 = vmul.u32.u64.low %v757_v39, %v752_v18  ;;  %v1653_v21 = vmul.u32.u64.high %v757_v39, %v752_v18, %v1652_v20  ;;  %v748_v25 = vsel %vm742_vm12, %v745_v13, %v747_v17 }
 0x116   : > { %v875_v22 = vshrl.u32 %v874_v16, 30  ;;  %v1655_v23 = vmul.u32.u64.low %v757_v39, %v756_v19  ;;  %v1656_v24 = vmul.u32.u64.high %v757_v39, %v756_v19, %v1655_v23  ;;  %v764_v29 = vmul.u32 %v757_v39, %v748_v25 }
 0x117   : > { %v767_v27 = vadd.s32 1, %v1653_v21  ;;  %v869_v42 = vadd.s32 %v1641_v46, %v1638_v45  ;;  %vm905_vm10 = vweird.f32 %v1613_v47 }
 0x118   : > { %v876_v26 = vshll.u32 %v875_v22, 30  ;;  %vm766_vm13 = vc.u32 %v1656_v24, %v1652_v20  ;;  %v765_v0 = vadd.s32 %v1652_v20, %v1656_v24  ;;  %v899_v3 = vsub.s32 4, %v875_v22 }
 0x119   : > { %v768_v30 = vsel %vm766_vm13, %v767_v27, %v1653_v21 }
 0x11a   : > { %v877_v28 = vsub.s32 %v873_v10, %v876_v26  ;;  %v769_v32 = vadd.s32 %v768_v30, %v764_v29  ;;  %v900_v12 = vsel %vm815_vm0, %v899_v3, %v875_v22 }
 0x11b   : > { %v902_v15 = vsel %vm814_vm1, 0, %v900_v12 }
 0x11c   : > { %v879_v31 = vsub.s32 0, %v877_v28  ;;  %v770_v34 = vadd.s32 536870912, %v769_v32  ;;  %v906_v17 = vadd.s32 3, %v902_v15  ;;  %v1113_v22 = vand.u32 3, %v902_v15 }
 0x11e   : > { %v1236_v33 = vmin.u32 %v879_v31, %v877_v28  ;;  %v771_v36 = vshrl.u32 %v770_v34, 30  ;;  %v907_v21 = vand.u32 3, %v906_v17  ;;  %vm1118_vm5 = vcmp.eq.s32.totalorder %v1113_v22, 2 }
 0x11f   : > { %vm1115_vm7 = vcmp.eq.s32.totalorder %v1113_v22, 0  ;;  %vm1114_vm9 = vcmp.lt.s32.totalorder %v1113_v22, 2 }
 0x120   : > { %v881_v35 = vclz %v1236_v33  ;;  %v772_v38 = vshll.u32 %v771_v36, 30  ;;  %v795_v49 = vsub.s32 4, %v771_v36  ;;  %vm912_vm4 = vcmp.eq.s32.totalorder %v907_v21, 2 }
 0x121   : > { %vm909_vm6 = vcmp.eq.s32.totalorder %v907_v21, 0  ;;  %vm908_vm8 = vcmp.lt.s32.totalorder %v907_v21, 2 }
 0x122   : > { %v1237_v37 = vadd.s32 4294967294, %v881_v35  ;;  %v773_v41 = vsub.s32 %v769_v32, %v772_v38  ;;  %v796_v23 = vsel %vm711_vm2, %v795_v49, %v771_v36 }
 0x123   : > { %v798_v27 = vsel %vm1671_vm3, 0, %v796_v23 }
 0x124   : > { %vm1238_vm14 = vcmp.lt.s32.totalorder %v1237_v37, 0  ;;  %v775_v44 = vsub.s32 0, %v773_v41  ;;  %v802_v34 = vadd.s32 3, %v798_v27  ;;  %v1010_v38 = vand.u32 3, %v798_v27 }
 0x125   : > { %v884_v40 = vsel %vm1238_vm14, 0, %v1237_v37 }
 0x126   : > { %v885_v43 = vsub.s32 32, %v884_v40  ;;  %v889_v39 = vsub.s32 4294967266, %v884_v40  ;;  %v886_v48 = vshll.u32 %v877_v28, %v884_v40  ;;  %v1232_v53 = vmin.u32 %v775_v44, %v773_v41 }
 0x127   : > { %v803_v37 = vand.u32 3, %v802_v34  ;;  %vm1015_vm12 = vcmp.eq.s32.totalorder %v1010_v38, 2  ;;  %vm1012_vm14 = vcmp.eq.s32.totalorder %v1010_v38, 0 }
 0x128   : > { %v887_v50 = vshrl.u32 %v869_v42, %v885_v43  ;;  %v890_v52 = vadd.s32 127, %v889_v39  ;;  %v777_v57 = vclz %v1232_v53 }
 0x129   : > { %vm808_vm11 = vcmp.eq.s32.totalorder %v803_v37, 2  ;;  %vm805_vm13 = vcmp.eq.s32.totalorder %v803_v37, 0 }
 0x12a   : > { %v888_v54 = vor.u32 %v887_v50, %v886_v48  ;;  %v891_v55 = vshll.u32 %v890_v52, 23  ;;  %v1233_v59 = vadd.s32 4294967294, %v777_v57 }
 0x12c   : > { %v892_v58 = vor.u32 4788187, %v891_v55  ;;  %v895_v61 = vcvt.s32.f32 %v888_v54  ;;  %vm1234_vm15 = vcmp.lt.s32.totalorder %v1233_v59, 0 }
 0x12d   : > { %v780_v63 = vsel %vm1234_vm15, 0, %v1233_v59  ;;  %vm804_vm15 = vcmp.lt.s32.totalorder %v803_v37, 2 }
 0x12e   : > { %v893_v60 = vand.u32 2147483647, %v892_v58  ;;  %v781_v45 = vsub.s32 32, %v780_v63  ;;  %v785_v46 = vsub.s32 4294967266, %v780_v63  ;;  %v782_v5 = vshll.u32 %v773_v41, %v780_v63 }
 0x130   : > { %v896_v62 = vmul.f32 %v895_v61, %v893_v60  ;;  %v783_v6 = vshrl.u32 %v765_v0, %v781_v45  ;;  %v786_v7 = vadd.s32 127, %v785_v46 }
 0x132   : > { %v897_v1 = vxor.u32 2147483648, %v896_v62  ;;  %v784_v10 = vor.u32 %v783_v6, %v782_v5  ;;  %v787_v11 = vshll.u32 %v786_v7, 23 }
 0x134   : > { %v898_v8 = vsel %vm815_vm0, %v897_v1, %v896_v62  ;;  %v788_v2 = vor.u32 4788187, %v787_v11  ;;  %v791_v14 = vcvt.s32.f32 %v784_v10  ;;  %vm1011_vm0 = vcmp.lt.s32.totalorder %v1010_v38, 2 }
 0x135   : > { %v901_v9 = vsel %vm814_vm1, %v1613_v47, %v898_v8  ;;  %vm801_vm1 = vweird.f32 %v1617_v51 }
 0x136   : > { %1390 = vcosq.f32 %v901_v9  ;;  %v789_v13 = vand.u32 2147483647, %v788_v2 }
 0x137   : > { %1392 = vsinq.f32 %v901_v9 }
 0x138   : > { %v792_v16 = vmul.f32 %v791_v14, %v789_v13 }
 0x13a   : > { %v793_v18 = vxor.u32 2147483648, %v792_v16 }
 0x13c   : > { %v794_v19 = vsel %vm711_vm2, %v793_v18, %v792_v16 }
 0x13d   : > { %v797_v20 = vsel %vm1671_vm3, %v1617_v51, %v794_v19 }
 0x13e   : > { %1394 = vcosq.f32 %v797_v20 }
 0x13f   : > { %1396 = vsinq.f32 %v797_v20 }
 0x143   : > { %v1391_v24 = vpop.eup %1390 }
 0x144   : > { %v1393_v25 = vpop.eup %1392  ;;  %v913_v26 = vxor.u32 2147483648, %v1391_v24 }
 0x145   : > { %v910_v56 = vxor.u32 2147483648, %v1393_v25 }
 0x146   : > { %v914_v28 = vsel %vm912_vm4, %v913_v26, %v1393_v25  ;;  %v1120_v29 = vsel %vm1118_vm5, %v913_v26, %v1393_v25 }
 0x147   : > { %v911_v30 = vsel %vm909_vm6, %v1391_v24, %v910_v56  ;;  %v1117_v31 = vsel %vm1115_vm7, %v1391_v24, %v910_v56 }
 0x148   : > { %v915_v32 = vsel %vm908_vm8, %v911_v30, %v914_v28  ;;  %v1121_v33 = vsel %vm1114_vm9, %v1117_v31, %v1120_v29 }
 0x149   : > { %v916_v35 = vsel %vm905_vm10, nan, %v915_v32  ;;  %v1122_v36 = vsel %vm905_vm10, nan, %v1121_v33 }
 0x14a   : > { %1124 = vst [vmem:[%s185_s9 + $0x8] sm:$0xff] %v916_v35  ;;  %1126 = vst [vmem:[%s185_s9 + $0x18] sm:$0xff] %v1122_v36 }
 0x14b   : > { %v1395_v40 = vpop.eup %1394 }
 0x14c   : > { %v1397_v41 = vpop.eup %1396  ;;  %v809_v42 = vxor.u32 2147483648, %v1395_v40 }
 0x14d   : > { %v806_v43 = vxor.u32 2147483648, %v1397_v41 }
 0x14e   : > { %v810_v47 = vsel %vm808_vm11, %v809_v42, %v1397_v41  ;;  %v1017_v39 = vsel %vm1015_vm12, %v809_v42, %v1397_v41 }
 0x14f   : > { %v807_v44 = vsel %vm805_vm13, %v1395_v40, %v806_v43  ;;  %v1014_v48 = vsel %vm1012_vm14, %v1395_v40, %v806_v43 }
 0x150   : > { %v811_v50 = vsel %vm804_vm15, %v807_v44, %v810_v47  ;;  %v1018_v52 = vsel %vm1011_vm0, %v1014_v48, %v1017_v39 }
 0x151   : > { %v812_v53 = vsel %vm801_vm1, nan, %v811_v50  ;;  %v1019_v54 = vsel %vm801_vm1, nan, %v1018_v52 }
 0x152   : > { %1123 = vst [vmem:[%s185_s9] sm:$0xff] %v812_v53  ;;  %1125 = vst [vmem:[%s185_s9 + $0x10] sm:$0xff] %v1019_v54 }
 0x153   : > { %1411 = shalt.err (!%p1408_p7)
}
 0x154   : > { %s1412_s5 = scalar_lea.hbm %s1691_s21, 512  ;;  %s1416_s8 = scalar_lea.hbm %s1750_s3, 2048 }
 0x155   : > { %p1413_p9 = scmp.ne.s32.totalorder %s1691_s21, %s1412_s5  ;;  %p1417_p12 = scmp.lt.s32.totalorder %s1691_s21, %s1750_s3 }
 0x156   : > { %p1418_p13 = scmp.lt.s32.totalorder %s1416_s8, %s1412_s5 }
 0x157   : > { %p1414_p10 = pnand %p1413_p9, %p1574_p3 }
 0x158   : > { %p1419_p0 = por %p1418_p13, %p1417_p12 }
 0x159   : > { %p1415_p11 = pneg %p1414_p10 }
 0x15b   : > { %p1420_p1 = pnand %p1419_p0, %p1415_p11 }
 0x15d   : > { %1423 = shalt.err (!%p1420_p1)
}
 0x15e   : > { %s1500_s20 = smov 128   ;;  %s1501_s15 = smov 256  }
 0x15f   : > { %s1502_s16 = smov 8  }
 0x160   : > { %1308 = dma.vmem_to_hbm [thread:$0]  (%p1574_p3), %s1686_s11, 512, %s1691_s21, %s1696_s24, %s1500_s20, %s1501_s15, %s1502_s16  }
 0x161 PF: > { %p1314_p2 = scmp.ge.s32.totalorder %s1490_s19, 2  ;;  %s1157_s27 = sand.u32 1, %s1462_s12  }
 0x162   : > { %s1158_s28 = scalar_lea.sflag [#allocation3], %s1157_s27 }
 0x163   : > { %p1311_p4 = pnand %p1314_p2, %p1583_p8 }
 0x165   : > { %p1312_p5 = pneg %p1311_p4 }
 0x167   : > { %1457 = dma.done.wait (%p1312_p5), %s1158_s28, 512  }
 0x168   : > { %1459 = vsyncadd (%p1312_p5), %s1158_s28, 4294966784  ;;  %s16_s19 = sadd.s32 1, %s1490_s19   ;;  %s1755_s12 = smov %s1466_s13 }
 0x169   : > { %p13_p6 = scmp.ge.s32.totalorder %s16_s19, 6   ;;  %s1756_s13 = smov %s1470_s14 }
 0x16a   : > { %s1757_s14 = smov %s1592_s30  ;;  %s1758_s15 = smov %s1482_s17 }
 0x16b   : > { %s1759_s16 = smov %s1486_s18  ;;  %s1760_s17 = smov %s1763_s22 }
 0x16c   : > { %s1761_s18 = smov %s1767_s23  ;;  %15 = sbr.rel (!%p13_p6) target bundleno = 5 (0x5), region = 67 }
 0x171   :  { %1163 = vsyncpa [#allocation3], 1 }
 0x172   :  { %1165 = vsyncpa [#allocation3 + $0x1], 1 }

</bundles_post_ra>
